<compile_context>
chip_gen: v5e
topology: v5e:2x2
jax: 0.10.0
libtpu: 0.0.40
codegen_flags: <defaults>
</compile_context>

<pallas_src>
import functools

import jax
import jax.numpy as jnp
from jax import lax
from jax.experimental import pallas as pl
from jax.experimental.pallas import tpu as pltpu

EPS_BN = 1e-5   # nn.BatchNorm2d default eps
EPS_LN = 1e-5   # nn.LayerNorm default eps


def _shift_lanes(v, off):
    """out[:, i] = v[:, i + off] if 0 <= i + off < width else 0 (static off)."""
    if off == 0:
        return v
    z = jnp.zeros((v.shape[0], abs(off)), v.dtype)
    if off > 0:
        return jnp.concatenate([v[:, off:], z], axis=1)
    return jnp.concatenate([z, v[:, :off]], axis=1)


def _ste_kernel(x_ref, w0_ref, b0_ref, wt_ref, bt_ref, sc_ref, sh_ref,
                ws_ref, bs_ref, lng_ref, lnb_ref, smask_ref, o_ref,
                *, T, N, K):
    L = wt_ref.shape[0]
    pad = K // 2

    # input_proj: 1x1 conv (1 -> D) on channel 0, computed in [D, T*N] layout
    xf = x_ref[0].astype(jnp.float32)                     # [1, TN]
    y = w0_ref[...] * xf + b0_ref[...]                    # [D, TN]

    # temporal conv layers: K taps fused into one (D, K*D) @ (K*D, TN) matmul.
    # A shift by (k-pad)*N lanes with zero fill is exactly zero padding along T.
    for l in range(L):
        parts = [_shift_lanes(y, (k - pad) * N) for k in range(K)]
        xk = jnp.concatenate(parts, axis=0).astype(jnp.bfloat16)   # [K*D, TN]
        conv = jnp.dot(wt_ref[l], xk, preferred_element_type=jnp.float32)
        conv = conv + bt_ref[l]                           # [D, TN]
        bn = conv * sc_ref[l] + sh_ref[l]                 # folded eval-mode BN
        y = y + jnp.maximum(bn, 0.0)                      # ReLU + residual

    # spatial conv: K taps fused; per-row (N) zero padding via precomputed masks
    parts = []
    for k in range(K):
        o = k - pad
        p_k = _shift_lanes(y, o)
        if o != 0:
            p_k = p_k * smask_ref[k:k + 1, :]             # zero cross-row wrap
        parts.append(p_k)
    xs = jnp.concatenate(parts, axis=0).astype(jnp.bfloat16)       # [K*D, TN]
    acc = jnp.dot(ws_ref[...], xs, preferred_element_type=jnp.float32)
    acc = acc + bs_ref[...]                               # [D, TN]

    # LayerNorm over the channel dim D (sublane axis)
    mu = jnp.mean(acc, axis=0, keepdims=True)             # [1, TN]
    var = jnp.mean((acc - mu) ** 2, axis=0, keepdims=True)
    out = (acc - mu) * lax.rsqrt(var + EPS_LN) * lng_ref[...] + lnb_ref[...]

    o_ref[0] = out.astype(o_ref.dtype)                    # lane-dense [D, TN] store


def short_term_encoder(x, kp):
    """x: [B, C, T, N] float32 -> [B, D, T, N] float32 (PyTorch layout)."""
    B, _, T, N = x.shape
    D = kp["w0"].shape[0]
    L, _, KD = kp["Wt"].shape
    K = KD // D
    TN = T * N
    pad = K // 2

    x_flat = x[:, 0, :, :].reshape(B, 1, TN)              # channel 0, lane-dense

    # validity masks for spatial taps (1.0 where n + (k-pad) is inside [0, N))
    n_idx = jnp.arange(TN, dtype=jnp.int32) % N
    smask = jnp.stack(
        [((n_idx + (k - pad) >= 0) & (n_idx + (k - pad) < N)).astype(jnp.float32)
         for k in range(K)], axis=0)                      # [K, TN]

    kernel = functools.partial(_ste_kernel, T=T, N=N, K=K)
    out = pl.pallas_call(
        kernel,
        out_shape=jax.ShapeDtypeStruct((B, D, TN), jnp.float32),
        grid_spec=pltpu.PrefetchScalarGridSpec(
            num_scalar_prefetch=0,
            grid=(B,),
            in_specs=[
                pl.BlockSpec((1, 1, TN), lambda b: (b, 0, 0)),     # x (flattened)
                pl.BlockSpec((D, 1), lambda b: (0, 0)),            # w0
                pl.BlockSpec((D, 1), lambda b: (0, 0)),            # b0
                pl.BlockSpec((L, D, KD), lambda b: (0, 0, 0)),     # Wt tap-fused bf16
                pl.BlockSpec((L, D, 1), lambda b: (0, 0, 0)),      # bt
                pl.BlockSpec((L, D, 1), lambda b: (0, 0, 0)),      # BN scale (folded)
                pl.BlockSpec((L, D, 1), lambda b: (0, 0, 0)),      # BN shift (folded)
                pl.BlockSpec((D, KD), lambda b: (0, 0)),           # Ws tap-fused bf16
                pl.BlockSpec((D, 1), lambda b: (0, 0)),            # bs
                pl.BlockSpec((D, 1), lambda b: (0, 0)),            # ln gamma
                pl.BlockSpec((D, 1), lambda b: (0, 0)),            # ln beta
                pl.BlockSpec((K, TN), lambda b: (0, 0)),           # spatial edge masks
            ],
            out_specs=pl.BlockSpec((1, D, TN), lambda b: (b, 0, 0)),
        ),
        compiler_params=pltpu.CompilerParams(dimension_semantics=("parallel",)),
    )(x_flat, kp["w0"], kp["b0"], kp["Wt"], kp["bt"], kp["bn_scale"],
      kp["bn_shift"], kp["Ws"], kp["bs"], kp["ln_g"], kp["ln_b"], smask)
    return out.reshape(B, D, T, N)                        # free reshape, no transpose


def init_params(key, D, K, L):
    """Deterministic synthetic parameters in PyTorch layout + kernel layout."""
    ks = jax.random.split(key, 12)
    W0 = 0.5 * jax.random.normal(ks[0], (D, 1, 1, 1), jnp.float32)
    b0 = 0.1 * jax.random.normal(ks[1], (D,), jnp.float32)
    Wt = jax.random.normal(ks[2], (L, D, D, K, 1), jnp.float32) / jnp.sqrt(D * K)
    bt = 0.1 * jax.random.normal(ks[3], (L, D), jnp.float32)
    gamma = 1.0 + 0.1 * jax.random.normal(ks[4], (L, D), jnp.float32)
    beta = 0.1 * jax.random.normal(ks[5], (L, D), jnp.float32)
    rmean = 0.1 * jax.random.normal(ks[6], (L, D), jnp.float32)
    rvar = jax.random.uniform(ks[7], (L, D), jnp.float32, 0.5, 1.5)
    Ws = jax.random.normal(ks[8], (D, D, 1, K), jnp.float32) / jnp.sqrt(D * K)
    bs = 0.1 * jax.random.normal(ks[9], (D,), jnp.float32)
    ln_g = 1.0 + 0.1 * jax.random.normal(ks[10], (D,), jnp.float32)
    ln_b = 0.1 * jax.random.normal(ks[11], (D,), jnp.float32)

    torch_p = dict(W0=W0, b0=b0, Wt=Wt, bt=bt, gamma=gamma, beta=beta,
                   rmean=rmean, rvar=rvar, Ws=Ws, bs=bs, ln_g=ln_g, ln_b=ln_b)

    # eval-mode BN folded to scale/shift
    bn_scale = gamma * lax.rsqrt(rvar + EPS_BN)                        # [L, D]
    bn_shift = beta - rmean * bn_scale                                 # [L, D]

    kernel_p = dict(
        w0=W0.reshape(D, 1),
        b0=b0.reshape(D, 1),
        # torch [L, Dout, Din, K, 1] -> tap-fused [L, Dout, K*Din] (row = k*D + d_in)
        Wt=jnp.transpose(Wt[..., 0], (0, 1, 3, 2)).reshape(L, D, K * D)
            .astype(jnp.bfloat16),
        bt=bt.reshape(L, D, 1),
        bn_scale=bn_scale.reshape(L, D, 1),
        bn_shift=bn_shift.reshape(L, D, 1),
        # torch [Dout, Din, 1, K] -> tap-fused [Dout, K*Din]
        Ws=jnp.transpose(Ws[:, :, 0, :], (0, 2, 1)).reshape(D, K * D)
            .astype(jnp.bfloat16),
        bs=bs.reshape(D, 1),
        ln_g=ln_g.reshape(D, 1),
        ln_b=ln_b.reshape(D, 1),
    )
    return torch_p, kernel_p


def reference(x, p, K, L):
    """Pure-JAX re-implementation of the PyTorch forward (eval-mode BN)."""
    pad = K // 2
    dn = ("NCHW", "OIHW", "NCHW")
    prec = lax.Precision.HIGHEST
    y = lax.conv_general_dilated(x[:, 0:1], p["W0"], (1, 1), "VALID",
                                 dimension_numbers=dn, precision=prec)
    y = y + p["b0"][None, :, None, None]
    for l in range(L):
        c = lax.conv_general_dilated(y, p["Wt"][l], (1, 1),
                                     ((pad, pad), (0, 0)),
                                     dimension_numbers=dn, precision=prec)
        c = c + p["bt"][l][None, :, None, None]
        scale = p["gamma"][l] / jnp.sqrt(p["rvar"][l] + EPS_BN)
        c = (c - p["rmean"][l][None, :, None, None]) * scale[None, :, None, None]
        c = c + p["beta"][l][None, :, None, None]
        y = y + jnp.maximum(c, 0.0)
    c = lax.conv_general_dilated(y, p["Ws"], (1, 1), ((0, 0), (pad, pad)),
                                 dimension_numbers=dn, precision=prec)
    y = c + p["bs"][None, :, None, None]
    yt = jnp.transpose(y, (0, 3, 2, 1))                       # [B, N, T, D]
    mu = jnp.mean(yt, -1, keepdims=True)
    var = jnp.mean((yt - mu) ** 2, -1, keepdims=True)
    yt = (yt - mu) / jnp.sqrt(var + EPS_LN) * p["ln_g"] + p["ln_b"]
    return jnp.transpose(yt, (0, 3, 2, 1))                    # [B, D, T, N]


if __name__ == "__main__":
    B, C, T, N = 2, 4, 8, 16        # x: [B, C, T, N]
    D, K, L = 32, 3, 2              # d_short, kernel_size, num_layers

    key = jax.random.PRNGKey(0)
    kx, kp_key = jax.random.split(key)
    x = jax.random.normal(kx, (B, C, T, N), jnp.float32)
    torch_p, kernel_p = init_params(kp_key, D, K, L)

    out = jax.block_until_ready(short_term_encoder(x, kernel_p))
    assert out.shape == (B, D, T, N), out.shape

    ref = reference(x, torch_p, K, L)
    rel = jnp.linalg.norm(out - ref) / jnp.linalg.norm(ref)
    assert float(rel) < 2e-2, f"relative error too large: {float(rel)}"

    print("KERNEL_OK")
</pallas_src>

<mosaic_0001>
module attributes {stable_mosaic.version = 11 : i64} {
  func.func @_ste_kernel(%arg0: i32, %arg1: memref<1x1x128xf32, #tpu.memory_space<vmem>>, %arg2: memref<32x1xf32, #tpu.memory_space<vmem>>, %arg3: memref<32x1xf32, #tpu.memory_space<vmem>>, %arg4: memref<2x32x96xbf16, #tpu.memory_space<vmem>>, %arg5: memref<2x32x1xf32, #tpu.memory_space<vmem>>, %arg6: memref<2x32x1xf32, #tpu.memory_space<vmem>>, %arg7: memref<2x32x1xf32, #tpu.memory_space<vmem>>, %arg8: memref<32x96xbf16, #tpu.memory_space<vmem>>, %arg9: memref<32x1xf32, #tpu.memory_space<vmem>>, %arg10: memref<32x1xf32, #tpu.memory_space<vmem>>, %arg11: memref<32x1xf32, #tpu.memory_space<vmem>>, %arg12: memref<3x128xf32, #tpu.memory_space<vmem>>, %arg13: memref<1x32x128xf32, #tpu.memory_space<vmem>>) attributes {dimension_semantics = [#tpu.dimension_semantics<parallel>], iteration_bounds = array<i64: 2>, scalar_prefetch = 0 : i64, scratch_operands = 0 : i64, tpu.core_type = #tpu.core_type<tc>, window_params = [{transform_indices = @transform_0, window_bounds = array<i64: 1, 1, 128>}, {pipeline_mode = #tpu.pipeline_mode<synchronous>, transform_indices = @transform_1, window_bounds = array<i64: 32, 1>}, {pipeline_mode = #tpu.pipeline_mode<synchronous>, transform_indices = @transform_2, window_bounds = array<i64: 32, 1>}, {pipeline_mode = #tpu.pipeline_mode<synchronous>, transform_indices = @transform_3, window_bounds = array<i64: 2, 32, 96>}, {pipeline_mode = #tpu.pipeline_mode<synchronous>, transform_indices = @transform_4, window_bounds = array<i64: 2, 32, 1>}, {pipeline_mode = #tpu.pipeline_mode<synchronous>, transform_indices = @transform_5, window_bounds = array<i64: 2, 32, 1>}, {pipeline_mode = #tpu.pipeline_mode<synchronous>, transform_indices = @transform_6, window_bounds = array<i64: 2, 32, 1>}, {pipeline_mode = #tpu.pipeline_mode<synchronous>, transform_indices = @transform_7, window_bounds = array<i64: 32, 96>}, {pipeline_mode = #tpu.pipeline_mode<synchronous>, transform_indices = @transform_8, window_bounds = array<i64: 32, 1>}, {pipeline_mode = #tpu.pipeline_mode<synchronous>, transform_indices = @transform_9, window_bounds = array<i64: 32, 1>}, {pipeline_mode = #tpu.pipeline_mode<synchronous>, transform_indices = @transform_10, window_bounds = array<i64: 32, 1>}, {pipeline_mode = #tpu.pipeline_mode<synchronous>, transform_indices = @transform_11, window_bounds = array<i64: 3, 128>}, {transform_indices = @transform_12, window_bounds = array<i64: 1, 32, 128>}]} {
    %c0 = arith.constant 0 : index
    %c0_0 = arith.constant 0 : index
    %c0_1 = arith.constant 0 : index
    %0 = vector.load %arg1[%c0, %c0_0, %c0_1] : memref<1x1x128xf32, #tpu.memory_space<vmem>>, vector<1x1x128xf32>
    %1 = vector.shape_cast %0 : vector<1x1x128xf32> to vector<1x128xf32>
    %c0_2 = arith.constant 0 : index
    %c0_3 = arith.constant 0 : index
    %2 = vector.load %arg2[%c0_2, %c0_3] : memref<32x1xf32, #tpu.memory_space<vmem>>, vector<32x1xf32>
    %3 = vector.broadcast %2 : vector<32x1xf32> to vector<32x128xf32>
    %4 = vector.broadcast %1 : vector<1x128xf32> to vector<32x128xf32>
    %5 = arith.mulf %3, %4 : vector<32x128xf32>
    %c0_4 = arith.constant 0 : index
    %c0_5 = arith.constant 0 : index
    %6 = vector.load %arg3[%c0_4, %c0_5] : memref<32x1xf32, #tpu.memory_space<vmem>>, vector<32x1xf32>
    %7 = vector.broadcast %6 : vector<32x1xf32> to vector<32x128xf32>
    %8 = arith.addf %5, %7 : vector<32x128xf32>
    %cst = arith.constant 0.000000e+00 : f32
    %9 = vector.broadcast %cst : f32 to vector<32x16xf32>
    %10 = vector.extract_strided_slice %8 {offsets = [0, 0], sizes = [32, 112], strides = [1, 1]} : vector<32x128xf32> to vector<32x112xf32>
    %11 = tpu.concatenate %9, %10 in 1 : vector<32x16xf32>, vector<32x112xf32> -> vector<32x128xf32>
    %cst_6 = arith.constant 0.000000e+00 : f32
    %12 = vector.broadcast %cst_6 : f32 to vector<32x16xf32>
    %13 = vector.extract_strided_slice %8 {offsets = [0, 16], sizes = [32, 112], strides = [1, 1]} : vector<32x128xf32> to vector<32x112xf32>
    %14 = tpu.concatenate %13, %12 in 1 : vector<32x112xf32>, vector<32x16xf32> -> vector<32x128xf32>
    %15 = tpu.concatenate %11, %8, %14 in 0 : vector<32x128xf32>, vector<32x128xf32>, vector<32x128xf32> -> vector<96x128xf32>
    %16 = arith.truncf %15 : vector<96x128xf32> to vector<96x128xbf16>
    %c0_7 = arith.constant 0 : index
    %c0_8 = arith.constant 0 : index
    %c0_9 = arith.constant 0 : index
    %17 = vector.load %arg4[%c0_7, %c0_8, %c0_9] : memref<2x32x96xbf16, #tpu.memory_space<vmem>>, vector<1x32x96xbf16>
    %18 = vector.shape_cast %17 : vector<1x32x96xbf16> to vector<32x96xbf16>
    %cst_10 = arith.constant dense<0.000000e+00> : vector<32x128xf32>
    %19 = tpu.matmul %18, %16, %cst_10 {dimension_numbers = #tpu.dot_dimension_numbers<[1], [0], [0], [1], [0, 0, 1, 1], [], []>} : vector<32x96xbf16>, vector<96x128xbf16>, vector<32x128xf32> -> vector<32x128xf32>
    %c0_11 = arith.constant 0 : index
    %c0_12 = arith.constant 0 : index
    %c0_13 = arith.constant 0 : index
    %20 = vector.load %arg5[%c0_11, %c0_12, %c0_13] : memref<2x32x1xf32, #tpu.memory_space<vmem>>, vector<1x32x1xf32>
    %21 = vector.shape_cast %20 : vector<1x32x1xf32> to vector<32x1xf32>
    %22 = vector.broadcast %21 : vector<32x1xf32> to vector<32x128xf32>
    %23 = arith.addf %19, %22 : vector<32x128xf32>
    %c0_14 = arith.constant 0 : index
    %c0_15 = arith.constant 0 : index
    %c0_16 = arith.constant 0 : index
    %24 = vector.load %arg6[%c0_14, %c0_15, %c0_16] : memref<2x32x1xf32, #tpu.memory_space<vmem>>, vector<1x32x1xf32>
    %25 = vector.shape_cast %24 : vector<1x32x1xf32> to vector<32x1xf32>
    %26 = vector.broadcast %25 : vector<32x1xf32> to vector<32x128xf32>
    %27 = arith.mulf %23, %26 : vector<32x128xf32>
    %c0_17 = arith.constant 0 : index
    %c0_18 = arith.constant 0 : index
    %c0_19 = arith.constant 0 : index
    %28 = vector.load %arg7[%c0_17, %c0_18, %c0_19] : memref<2x32x1xf32, #tpu.memory_space<vmem>>, vector<1x32x1xf32>
    %29 = vector.shape_cast %28 : vector<1x32x1xf32> to vector<32x1xf32>
    %30 = vector.broadcast %29 : vector<32x1xf32> to vector<32x128xf32>
    %31 = arith.addf %27, %30 : vector<32x128xf32>
    %cst_20 = arith.constant 0.000000e+00 : f32
    %32 = vector.broadcast %cst_20 : f32 to vector<32x128xf32>
    %33 = arith.maximumf %31, %32 : vector<32x128xf32>
    %34 = arith.addf %8, %33 : vector<32x128xf32>
    %cst_21 = arith.constant 0.000000e+00 : f32
    %35 = vector.broadcast %cst_21 : f32 to vector<32x16xf32>
    %36 = vector.extract_strided_slice %34 {offsets = [0, 0], sizes = [32, 112], strides = [1, 1]} : vector<32x128xf32> to vector<32x112xf32>
    %37 = tpu.concatenate %35, %36 in 1 : vector<32x16xf32>, vector<32x112xf32> -> vector<32x128xf32>
    %cst_22 = arith.constant 0.000000e+00 : f32
    %38 = vector.broadcast %cst_22 : f32 to vector<32x16xf32>
    %39 = vector.extract_strided_slice %34 {offsets = [0, 16], sizes = [32, 112], strides = [1, 1]} : vector<32x128xf32> to vector<32x112xf32>
    %40 = tpu.concatenate %39, %38 in 1 : vector<32x112xf32>, vector<32x16xf32> -> vector<32x128xf32>
    %41 = tpu.concatenate %37, %34, %40 in 0 : vector<32x128xf32>, vector<32x128xf32>, vector<32x128xf32> -> vector<96x128xf32>
    %42 = arith.truncf %41 : vector<96x128xf32> to vector<96x128xbf16>
    %c1 = arith.constant 1 : index
    %c0_23 = arith.constant 0 : index
    %c0_24 = arith.constant 0 : index
    %43 = vector.load %arg4[%c1, %c0_23, %c0_24] : memref<2x32x96xbf16, #tpu.memory_space<vmem>>, vector<1x32x96xbf16>
    %44 = vector.shape_cast %43 : vector<1x32x96xbf16> to vector<32x96xbf16>
    %cst_25 = arith.constant dense<0.000000e+00> : vector<32x128xf32>
    %45 = tpu.matmul %44, %42, %cst_25 {dimension_numbers = #tpu.dot_dimension_numbers<[1], [0], [0], [1], [0, 0, 1, 1], [], []>} : vector<32x96xbf16>, vector<96x128xbf16>, vector<32x128xf32> -> vector<32x128xf32>
    %c1_26 = arith.constant 1 : index
    %c0_27 = arith.constant 0 : index
    %c0_28 = arith.constant 0 : index
    %46 = vector.load %arg5[%c1_26, %c0_27, %c0_28] : memref<2x32x1xf32, #tpu.memory_space<vmem>>, vector<1x32x1xf32>
    %47 = vector.shape_cast %46 : vector<1x32x1xf32> to vector<32x1xf32>
    %48 = vector.broadcast %47 : vector<32x1xf32> to vector<32x128xf32>
    %49 = arith.addf %45, %48 : vector<32x128xf32>
    %c1_29 = arith.constant 1 : index
    %c0_30 = arith.constant 0 : index
    %c0_31 = arith.constant 0 : index
    %50 = vector.load %arg6[%c1_29, %c0_30, %c0_31] : memref<2x32x1xf32, #tpu.memory_space<vmem>>, vector<1x32x1xf32>
    %51 = vector.shape_cast %50 : vector<1x32x1xf32> to vector<32x1xf32>
    %52 = vector.broadcast %51 : vector<32x1xf32> to vector<32x128xf32>
    %53 = arith.mulf %49, %52 : vector<32x128xf32>
    %c1_32 = arith.constant 1 : index
    %c0_33 = arith.constant 0 : index
    %c0_34 = arith.constant 0 : index
    %54 = vector.load %arg7[%c1_32, %c0_33, %c0_34] : memref<2x32x1xf32, #tpu.memory_space<vmem>>, vector<1x32x1xf32>
    %55 = vector.shape_cast %54 : vector<1x32x1xf32> to vector<32x1xf32>
    %56 = vector.broadcast %55 : vector<32x1xf32> to vector<32x128xf32>
    %57 = arith.addf %53, %56 : vector<32x128xf32>
    %cst_35 = arith.constant 0.000000e+00 : f32
    %58 = vector.broadcast %cst_35 : f32 to vector<32x128xf32>
    %59 = arith.maximumf %57, %58 : vector<32x128xf32>
    %60 = arith.addf %34, %59 : vector<32x128xf32>
    %cst_36 = arith.constant 0.000000e+00 : f32
    %61 = vector.broadcast %cst_36 : f32 to vector<32x1xf32>
    %62 = vector.extract_strided_slice %60 {offsets = [0, 0], sizes = [32, 127], strides = [1, 1]} : vector<32x128xf32> to vector<32x127xf32>
    %63 = tpu.concatenate %61, %62 in 1 : vector<32x1xf32>, vector<32x127xf32> -> vector<32x128xf32>
    %c0_37 = arith.constant 0 : index
    %c0_38 = arith.constant 0 : index
    %64 = vector.load %arg12[%c0_37, %c0_38] : memref<3x128xf32, #tpu.memory_space<vmem>>, vector<1x128xf32>
    %65 = vector.broadcast %64 : vector<1x128xf32> to vector<32x128xf32>
    %66 = arith.mulf %63, %65 : vector<32x128xf32>
    %cst_39 = arith.constant 0.000000e+00 : f32
    %67 = vector.broadcast %cst_39 : f32 to vector<32x1xf32>
    %68 = vector.extract_strided_slice %60 {offsets = [0, 1], sizes = [32, 127], strides = [1, 1]} : vector<32x128xf32> to vector<32x127xf32>
    %69 = tpu.concatenate %68, %67 in 1 : vector<32x127xf32>, vector<32x1xf32> -> vector<32x128xf32>
    %c2 = arith.constant 2 : index
    %c0_40 = arith.constant 0 : index
    %70 = vector.load %arg12[%c2, %c0_40] : memref<3x128xf32, #tpu.memory_space<vmem>>, vector<1x128xf32>
    %71 = vector.broadcast %70 : vector<1x128xf32> to vector<32x128xf32>
    %72 = arith.mulf %69, %71 : vector<32x128xf32>
    %73 = tpu.concatenate %66, %60, %72 in 0 : vector<32x128xf32>, vector<32x128xf32>, vector<32x128xf32> -> vector<96x128xf32>
    %74 = arith.truncf %73 : vector<96x128xf32> to vector<96x128xbf16>
    %c0_41 = arith.constant 0 : index
    %c0_42 = arith.constant 0 : index
    %75 = vector.load %arg8[%c0_41, %c0_42] : memref<32x96xbf16, #tpu.memory_space<vmem>>, vector<32x96xbf16>
    %cst_43 = arith.constant dense<0.000000e+00> : vector<32x128xf32>
    %76 = tpu.matmul %75, %74, %cst_43 {dimension_numbers = #tpu.dot_dimension_numbers<[1], [0], [0], [1], [0, 0, 1, 1], [], []>} : vector<32x96xbf16>, vector<96x128xbf16>, vector<32x128xf32> -> vector<32x128xf32>
    %c0_44 = arith.constant 0 : index
    %c0_45 = arith.constant 0 : index
    %77 = vector.load %arg9[%c0_44, %c0_45] : memref<32x1xf32, #tpu.memory_space<vmem>>, vector<32x1xf32>
    %78 = vector.broadcast %77 : vector<32x1xf32> to vector<32x128xf32>
    %79 = arith.addf %76, %78 : vector<32x128xf32>
    %cst_46 = arith.constant dense<0.000000e+00> : vector<128xf32>
    %80 = vector.multi_reduction <add>, %79, %cst_46 [0] : vector<32x128xf32> to vector<128xf32>
    %81 = vector.shape_cast %80 : vector<128xf32> to vector<1x128xf32>
    %cst_47 = arith.constant 3.200000e+01 : f32
    %82 = vector.broadcast %cst_47 : f32 to vector<1x128xf32>
    %83 = arith.divf %81, %82 : vector<1x128xf32>
    %84 = vector.broadcast %83 : vector<1x128xf32> to vector<32x128xf32>
    %85 = arith.subf %79, %84 : vector<32x128xf32>
    %86 = arith.mulf %85, %85 : vector<32x128xf32>
    %cst_48 = arith.constant dense<0.000000e+00> : vector<128xf32>
    %87 = vector.multi_reduction <add>, %86, %cst_48 [0] : vector<32x128xf32> to vector<128xf32>
    %88 = vector.shape_cast %87 : vector<128xf32> to vector<1x128xf32>
    %cst_49 = arith.constant 3.200000e+01 : f32
    %89 = vector.broadcast %cst_49 : f32 to vector<1x128xf32>
    %90 = arith.divf %88, %89 : vector<1x128xf32>
    %91 = vector.broadcast %83 : vector<1x128xf32> to vector<32x128xf32>
    %92 = arith.subf %79, %91 : vector<32x128xf32>
    %cst_50 = arith.constant 9.99999974E-6 : f32
    %93 = vector.broadcast %cst_50 : f32 to vector<1x128xf32>
    %94 = arith.addf %90, %93 : vector<1x128xf32>
    %95 = math.rsqrt %94 : vector<1x128xf32>
    %96 = vector.broadcast %95 : vector<1x128xf32> to vector<32x128xf32>
    %97 = arith.mulf %92, %96 : vector<32x128xf32>
    %c0_51 = arith.constant 0 : index
    %c0_52 = arith.constant 0 : index
    %98 = vector.load %arg10[%c0_51, %c0_52] : memref<32x1xf32, #tpu.memory_space<vmem>>, vector<32x1xf32>
    %99 = vector.broadcast %98 : vector<32x1xf32> to vector<32x128xf32>
    %100 = arith.mulf %97, %99 : vector<32x128xf32>
    %c0_53 = arith.constant 0 : index
    %c0_54 = arith.constant 0 : index
    %101 = vector.load %arg11[%c0_53, %c0_54] : memref<32x1xf32, #tpu.memory_space<vmem>>, vector<32x1xf32>
    %102 = vector.broadcast %101 : vector<32x1xf32> to vector<32x128xf32>
    %103 = arith.addf %100, %102 : vector<32x128xf32>
    %c0_55 = arith.constant 0 : index
    %c0_56 = arith.constant 0 : index
    %c0_57 = arith.constant 0 : index
    %104 = vector.load %arg13[%c0_55, %c0_56, %c0_57] : memref<1x32x128xf32, #tpu.memory_space<vmem>>, vector<1x32x128xf32>
    %105 = vector.shape_cast %104 : vector<1x32x128xf32> to vector<32x128xf32>
    %106 = vector.shape_cast %103 : vector<32x128xf32> to vector<1x32x128xf32>
    tpu.vector_store %arg13[%c0_55, %c0_56, %c0_57], %106 {strides = array<i32>} : memref<1x32x128xf32, #tpu.memory_space<vmem>>, vector<1x32x128xf32>,
    return
  }
  func.func @transform_0(%arg0: i32) -> (i32, i32, i32) {
    %c0_i32 = arith.constant 0 : i32
    %c0_i32_0 = arith.constant 0 : i32
    %c0_i32_1 = arith.constant 0 : i32
    return %arg0, %c0_i32, %c0_i32_0 : i32, i32, i32
  }
  func.func @transform_1(%arg0: i32) -> (i32, i32) {
    %c0_i32 = arith.constant 0 : i32
    %c0_i32_0 = arith.constant 0 : i32
    %c0_i32_1 = arith.constant 0 : i32
    return %c0_i32, %c0_i32_0 : i32, i32
  }
  func.func @transform_2(%arg0: i32) -> (i32, i32) {
    %c0_i32 = arith.constant 0 : i32
    %c0_i32_0 = arith.constant 0 : i32
    %c0_i32_1 = arith.constant 0 : i32
    return %c0_i32, %c0_i32_0 : i32, i32
  }
  func.func @transform_3(%arg0: i32) -> (i32, i32, i32) {
    %c0_i32 = arith.constant 0 : i32
    %c0_i32_0 = arith.constant 0 : i32
    %c0_i32_1 = arith.constant 0 : i32
    %c0_i32_2 = arith.constant 0 : i32
    return %c0_i32, %c0_i32_0, %c0_i32_1 : i32, i32, i32
  }
  func.func @transform_4(%arg0: i32) -> (i32, i32, i32) {
    %c0_i32 = arith.constant 0 : i32
    %c0_i32_0 = arith.constant 0 : i32
    %c0_i32_1 = arith.constant 0 : i32
    %c0_i32_2 = arith.constant 0 : i32
    return %c0_i32, %c0_i32_0, %c0_i32_1 : i32, i32, i32
  }
  func.func @transform_5(%arg0: i32) -> (i32, i32, i32) {
    %c0_i32 = arith.constant 0 : i32
    %c0_i32_0 = arith.constant 0 : i32
    %c0_i32_1 = arith.constant 0 : i32
    %c0_i32_2 = arith.constant 0 : i32
    return %c0_i32, %c0_i32_0, %c0_i32_1 : i32, i32, i32
  }
  func.func @transform_6(%arg0: i32) -> (i32, i32, i32) {
    %c0_i32 = arith.constant 0 : i32
    %c0_i32_0 = arith.constant 0 : i32
    %c0_i32_1 = arith.constant 0 : i32
    %c0_i32_2 = arith.constant 0 : i32
    return %c0_i32, %c0_i32_0, %c0_i32_1 : i32, i32, i32
  }
  func.func @transform_7(%arg0: i32) -> (i32, i32) {
    %c0_i32 = arith.constant 0 : i32
    %c0_i32_0 = arith.constant 0 : i32
    %c0_i32_1 = arith.constant 0 : i32
    return %c0_i32, %c0_i32_0 : i32, i32
  }
  func.func @transform_8(%arg0: i32) -> (i32, i32) {
    %c0_i32 = arith.constant 0 : i32
    %c0_i32_0 = arith.constant 0 : i32
    %c0_i32_1 = arith.constant 0 : i32
    return %c0_i32, %c0_i32_0 : i32, i32
  }
  func.func @transform_9(%arg0: i32) -> (i32, i32) {
    %c0_i32 = arith.constant 0 : i32
    %c0_i32_0 = arith.constant 0 : i32
    %c0_i32_1 = arith.constant 0 : i32
    return %c0_i32, %c0_i32_0 : i32, i32
  }
  func.func @transform_10(%arg0: i32) -> (i32, i32) {
    %c0_i32 = arith.constant 0 : i32
    %c0_i32_0 = arith.constant 0 : i32
    %c0_i32_1 = arith.constant 0 : i32
    return %c0_i32, %c0_i32_0 : i32, i32
  }
  func.func @transform_11(%arg0: i32) -> (i32, i32) {
    %c0_i32 = arith.constant 0 : i32
    %c0_i32_0 = arith.constant 0 : i32
    %c0_i32_1 = arith.constant 0 : i32
    return %c0_i32, %c0_i32_0 : i32, i32
  }
  func.func @transform_12(%arg0: i32) -> (i32, i32, i32) {
    %c0_i32 = arith.constant 0 : i32
    %c0_i32_0 = arith.constant 0 : i32
    %c0_i32_1 = arith.constant 0 : i32
    return %arg0, %c0_i32, %c0_i32_0 : i32, i32, i32
  }
}

</mosaic_0001>

<bundles_post_ra>
// kernel: tpu_custom_call.1
= control target key start
LH: loop header
LB: loop body
LE: loop exit
PB: predicated region body
PF: predicated region fallthrough
CT: control target
= control target key end

     0   :  { %17 = vsyncpa [#allocation3], 0  ;;  %s1795_s0 = inlined_call_operand.vmem [shape: f32[2,1,128], index: 0, kind: input, shape index: {}]   ;;  %s1796_s1 = inlined_call_operand.vmem [shape: f32[32,1], index: 1, kind: input, shape index: {}]   ;;  %s1797_s2 = inlined_call_operand.vmem [shape: f32[32,1], index: 2, kind: input, shape index: {}]   ;;  %s1798_s3 = inlined_call_operand.vmem [shape: bf16[2,32,96], index: 3, kind: input, shape index: {}]   ;;  %s1799_s4 = inlined_call_operand.vmem [shape: f32[2,32,1], index: 4, kind: input, shape index: {}]   ;;  %s1800_s5 = inlined_call_operand.vmem [shape: f32[2,32,1], index: 5, kind: input, shape index: {}]   ;;  %s1801_s6 = inlined_call_operand.vmem [shape: f32[2,32,1], index: 6, kind: input, shape index: {}]   ;;  %s1802_s7 = inlined_call_operand.vmem [shape: bf16[32,96], index: 7, kind: input, shape index: {}]   ;;  %s1803_s8 = inlined_call_operand.vmem [shape: f32[32,1], index: 8, kind: input, shape index: {}]   ;;  %s1804_s9 = inlined_call_operand.vmem [shape: f32[32,1], index: 9, kind: input, shape index: {}]   ;;  %s1805_s10 = inlined_call_operand.vmem [shape: f32[32,1], index: 10, kind: input, shape index: {}]   ;;  %s1806_s11 = inlined_call_operand.vmem [shape: f32[3,128], index: 11, kind: input, shape index: {}]   ;;  %s1807_s12 = inlined_call_operand.hbm [shape: f32[2,32,128], index: 12, kind: output, shape index: {}]  }
   0x1   :  { %19 = vsyncpa [#allocation3 + $0x1], 0  ;;  %s1451_s21 = smov 0   ;;  %s1453_s22 = smov 0  }
   0x2   :  { %s1455_s23 = smov 0   ;;  %s1457_s24 = smov 0  }
   0x3 LB: > { %1811 = sst [smem:[#allocation5_spill]] %s1372_s23  ;;  %s1472_s25 = sadd.s32 4294967295, %s1376_s24   ;;  %s1376_s24 = sphi %s1457_s24, %s1820_s24   ;;  %s1372_s23 = sphi %s1455_s23, %s1822_s23   ;;  %s1368_s22 = sphi %s1453_s22, %s1824_s22   ;;  %s1364_s21 = sphi %s1451_s21, %s1823_s21  }
   0x4   : > { %s1116_s26 = sadd.s32 4294967294, %s1376_s24   ;;  %s1476_s27 = sadd.s32 1, %s1376_s24  }
   0x5   : > { %1812 = sst [smem:[#allocation6_spill]] %s1476_s27  ;;  %s289_s28 = sadd.s32 1, %s1372_s23 }
   0x6   : > { %s286_s29 = ssub.s32 %s1376_s24, %s1476_s27  ;;  %p299_p0 = scmp.ne.s32.totalorder %s1372_s23, %s1368_s22 }
   0x7   : > { %p287_p1 = scmp.eq.s32.totalorder %s286_s29, 0  ;;  %p300_p2 = scmp.eq.s32.totalorder %s1472_s25, 1 }
   0x8   : > { %p305_p3 = scmp.ne.s32.totalorder %s1368_s22, %s1364_s21  ;;  %p306_p4 = scmp.eq.s32.totalorder %s1116_s26, 1 }
   0x9   : > { %s1487_s30 = scalar_select %p287_p1, %s1372_s23, %s289_s28  }
   0xa   : > { %p1489_p5 = por %p300_p2, %p299_p0  ;;  %p1493_p6 = por %p306_p4, %p305_p3 }
   0xb   : > { %1813 = sst [smem:[#allocation7_spill]] %s1487_s30  ;;  %p1119_p7 = scmp.ge.s32.totalorder %s1376_s24, 1 }
   0xc   : > { %p363_p8 = scmp.lt.s32.totalorder %s1376_s24, 3 }
   0xe   : > { %p364_p9 = pnand %p1119_p7, %p363_p8 }
   0xf   : > { %p403_p10 = scmp.lt.s32.totalorder (!%p364_p9), %s1472_s25, 1  ;;  %s1379_s23 = smov (!%p364_p9), 16  }
  0x10   : > { %367 = sbr.rel (%p364_p9) target bundleno = 1120 (0x460), region = 68  ;;  %s1380_s27 = smov (!%p364_p9), 112  }
  0x11   : > { %s1382_s16 = smov (!%p364_p9), 1  }
  0x15   : > { %v441_v0 = vld [vmem:[%s1797_s2 + $0x10] sm:$0xff]  ;;  %v1378_v2 = vmov 0   ;;  %v408_v3 = vld [vmem:[%s1796_s1] sm:$0xff]  ;;  %s404_s26 = scalar_select %p403_p10, %s1472_s25, 1  ;;  %v442_v4 = vld [vmem:[%s1797_s2 + $0x18] sm:$0xff]  ;;  %vm500_vm0 = vcmask 916480  }
  0x16   : > { %v410_v1 = vld [vmem:[%s1796_s1 + $0x10] sm:$0xff]  ;;  %1265 = vset.pattern.permute.xlu1 %v1378_v2  ;;  %1264 = vset.pattern.permute.xlu0 %v1378_v2  ;;  %v411_v5 = vld [vmem:[%s1796_s1 + $0x18] sm:$0xff]  ;;  %v409_v6 = vld [vmem:[%s1796_s1 + $0x8] sm:$0xff]  ;;  %vm483_vm2 = vcmask 130048   ;;  %vm549_vm5 = vcmask 785408   ;;  %vm851_vm6 = vcmask 1039360  }
  0x17   : > { %455 = vperm.xlu1 %1265, %v441_v0   ;;  %424 = vperm.xlu0 %1264, %v410_v1   ;;  %s405_s15 = scalar_lea.vmem %s1795_s0, %s404_s26  ;;  %v440_v7 = vld [vmem:[%s1797_s2 + $0x8] sm:$0xff]  ;;  %v439_v8 = vld [vmem:[%s1797_s2] sm:$0xff]  ;;  %v518_v28 = vld [vmem:[%s1799_s4 + $0x18] sm:$0xff]  ;;  %vm828_vm7 = vcmask 7168  }
  0x18   : > { %1266 = vset.pattern.permute.xlu2 %v1378_v2  ;;  %v1307_v12 = vld [vmem:[%s405_s15] ss:$0 sm:$0xff]  ;;  %v517_v29 = vld [vmem:[%s1799_s4 + $0x10] sm:$0xff]  ;;  %v578_v32 = vld [vmem:[%s1800_s5 + $0x18] sm:$0xff]  ;;  %s1381_s15 = smov 127  }
  0x19   : > { %414 = vperm.xlu2 %1266, %v408_v3   ;;  %v515_v30 = vld [vmem:[%s1799_s4] sm:$0xff]  ;;  %v577_v31 = vld [vmem:[%s1800_s5 + $0x10] sm:$0xff]  ;;  %v606_v33 = vld [vmem:[%s1801_s6 + $0x18] sm:$0xff] }
  0x1a   : > { %v516_v34 = vld [vmem:[%s1799_s4 + $0x8] sm:$0xff]  ;;  %v605_v35 = vld [vmem:[%s1801_s6 + $0x10] sm:$0xff]  ;;  %v603_v36 = vld [vmem:[%s1801_s6] sm:$0xff] }
  0x1b   : > { %v575_v37 = vld [vmem:[%s1800_s5] sm:$0xff]  ;;  %v576_v38 = vld [vmem:[%s1800_s5 + $0x8] sm:$0xff]  ;;  %vm1580_vm1 = vmpackc.low %vm500_vm0, %vm500_vm0 }
  0x1c   : > { %v604_v39 = vld [vmem:[%s1801_s6 + $0x8] sm:$0xff]  ;;  %vm1135_vm3 = vmneg %vm483_vm2  ;;  %v1204_v60 = vld [vmem:[%s1798_s3] sm:$0xff] }
  0x1d   : > { %vm1596_vm4 = vmpackc.low %vm1135_vm3, %vm1135_vm3  ;;  %v1205_v61 = vld [vmem:[%s1798_s3 + $0x8] sm:$0xff] }
  0x1f   : > { %460 = vperm.xlu1 %1265, %v442_v4   ;;  %429 = vperm.xlu0 %1264, %v411_v5  }
  0x21   : > { %419 = vperm.xlu2 %1266, %v409_v6  }
  0x27   : > { %450 = vperm.xlu1 %1265, %v440_v7   ;;  %445 = vperm.xlu0 %1264, %v439_v8  }
  0x73   : > { %v415_v11 = vpop.permute.xlu2 %414 }
  0x74   : > { %v435_v21 = vmul.f32 %v1307_v12, %v415_v11 }
  0x7b   : > { %v420_v19 = vpop.permute.xlu2 %419 }
  0x7c   : > { %v436_v22 = vmul.f32 %v1307_v12, %v420_v19 }
  0x89   : > { %v456_v9 = vpop.permute.xlu1 %455  ;;  %v425_v10 = vpop.permute.xlu0 %424 }
  0x8a   : > { %v437_v13 = vmul.f32 %v1307_v12, %v425_v10 }
  0x8c   : > { %v1528_v17 = vadd.f32 %v456_v9, %v437_v13 }
  0x91   : > { %v461_v14 = vpop.permute.xlu1 %460  ;;  %v430_v15 = vpop.permute.xlu0 %429 }
  0x92   : > { %v438_v16 = vmul.f32 %v1307_v12, %v430_v15 }
  0x94   : > { %v1530_v18 = vadd.f32 %v461_v14, %v438_v16 }
  0x96   : > { %v1277_v20 = vpack.i.bf16 %v1530_v18, %v1528_v17  ;;  %v508_v49 = vpack.c.bf16 %v1530_v18, %v1528_v17 }
  0x98   : > { %1278 = vrot.lane.b32.xlu1 %v1277_v20, %s1379_s23  ;;  %1268 = vrot.lane.b32.xlu2 %v1277_v20, %s1380_s27 }
  0x99   : > { %v451_v23 = vpop.permute.xlu1 %450  ;;  %v446_v24 = vpop.permute.xlu0 %445 }
  0x9a   : > { %v1536_v25 = vadd.f32 %v451_v23, %v436_v22  ;;  %v1538_v26 = vadd.f32 %v446_v24, %v435_v21 }
  0x9c   : > { %v1272_v27 = vpack.i.bf16 %v1536_v25, %v1538_v26  ;;  %v507_v53 = vpack.c.bf16 %v1536_v25, %v1538_v26 }
  0x9e   : > { %1273 = vrot.lane.b32.xlu0 %v1272_v27, %s1380_s27 }
  0xa0   : > { %536 = vperm.xlu1 %1265, %v518_v28   ;;  %1283 = vrot.lane.b32.xlu2 %v1272_v27, %s1379_s23 }
  0xa6   : > { %531 = vperm.xlu0 %1264, %v517_v29  }
  0xa8   : > { %521 = vperm.xlu1 %1265, %v515_v30   ;;  %591 = vperm.xlu2 %1266, %v577_v31  }
  0xae   : > { %596 = vperm.xlu0 %1264, %v578_v32  }
  0xb0   : > { %624 = vperm.xlu1 %1265, %v606_v33   ;;  %526 = vperm.xlu2 %1266, %v516_v34  }
  0xb6   : > { %619 = vperm.xlu0 %1264, %v605_v35  }
  0xb8   : > { %609 = vperm.xlu1 %1265, %v603_v36   ;;  %581 = vperm.xlu2 %1266, %v575_v37  }
  0xbe   : > { %586 = vperm.xlu0 %1264, %v576_v38  }
  0xc0   : > { %614 = vperm.xlu2 %1266, %v604_v39   ;;  %v1151_v39 = vld [vmem:[%s1799_s4 + $0x20] sm:$0xff] }
  0xf2   : > { %v1269_v40 = vpop.permute.xlu2 %1268 }
  0xf3   : > { %v1271_v41 = vunpack.i.h.bf16 %v1269_v40  ;;  %v1270_v42 = vunpack.i.l.bf16 %v1269_v40  ;;  %v1183_v40 = vld [vmem:[%s1800_s5 + $0x30] sm:$0xff] }
  0xf5   : > { %v1130_v44 = vpack.c.bf16 %v1271_v41, %v1270_v42  ;;  %v1187_v41 = vld [vmem:[%s1801_s6 + $0x30] sm:$0xff]  ;;  %v1188_v42 = vld [vmem:[%s1801_s6 + $0x38] sm:$0xff] }
  0xf7   : > { %1131 = vmatpush.bf16.msk.msra.mxu0 %vm1580_vm1, %v1130_v44  ;;  %1211 = vmatpush.bf16.msk.msra.mxu3 %vm1580_vm1, %v1130_v44  ;;  %v1152_v44 = vld [vmem:[%s1799_s4 + $0x28] sm:$0xff] }
  0xfa   : > { %v1284_v54 = vpop.permute.xlu2 %1283 }
  0xfb   : > { %v1286_v56 = vunpack.i.h.bf16 %v1284_v54  ;;  %v1285_v57 = vunpack.i.l.bf16 %v1284_v54 }
  0xfd   : > { %v1143_v59 = vpack.c.bf16 %v1286_v56, %v1285_v57 }
 0x102   : > { %v592_v0 = vpop.permute.xlu2 %591 }
 0x10a   : > { %v1279_v50 = vpop.permute.xlu1 %1278  ;;  %v527_v3 = vpop.permute.xlu2 %526 }
 0x10b   : > { %v1281_v51 = vunpack.i.h.bf16 %v1279_v50  ;;  %v1280_v52 = vunpack.i.l.bf16 %v1279_v50 }
 0x10d   : > { %v1138_v58 = vpack.c.bf16 %v1281_v51, %v1280_v52 }
 0x110   : > { %v1274_v45 = vpop.permute.xlu0 %1273 }
 0x111   : > { %v1276_v46 = vunpack.i.h.bf16 %v1274_v45  ;;  %v1275_v47 = vunpack.i.l.bf16 %v1274_v45  ;;  %v1182_v45 = vld [vmem:[%s1800_s5 + $0x28] sm:$0xff] }
 0x112   : > { %v537_v62 = vpop.permute.xlu1 %536  ;;  %v582_v8 = vpop.permute.xlu2 %581 }
 0x113   : > { %v1133_v48 = vpack.c.bf16 %v1276_v46, %v1275_v47  ;;  %v1185_v46 = vld [vmem:[%s1801_s6 + $0x20] sm:$0xff] }
 0x114   : > { %v1181_v47 = vld [vmem:[%s1800_s5 + $0x20] sm:$0xff] }
 0x115   : > { %1134 = vmatpush.bf16.msk.msra.mxu0 %vm1580_vm1, %v1133_v48  ;;  %1212 = vmatpush.bf16.msk.msra.mxu3 %vm1580_vm1, %v1133_v48  ;;  %v1186_v48 = vld [vmem:[%s1801_s6 + $0x28] sm:$0xff] }
 0x118   : > { %v532_v63 = vpop.permute.xlu0 %531 }
 0x119   : > { %560 = vmatpush.bf16.msra.mxu0 %v508_v49  ;;  %1213 = vmatpush.bf16.msra.mxu3 %v508_v49 }
 0x11a   : > { %v522_v1 = vpop.permute.xlu1 %521  ;;  %v615_v21 = vpop.permute.xlu2 %614 }
 0x11d   : > { %561 = vmatpush.bf16.msra.mxu0 %v507_v53  ;;  %1214 = vmatpush.bf16.msra.mxu3 %v507_v53 }
 0x120   : > { %v597_v2 = vpop.permute.xlu0 %596 }
 0x121   : > { %1139 = vmatpush.bf16.msk.msra.mxu0 %vm1596_vm4, %v1138_v58  ;;  %1215 = vmatpush.bf16.msk.msra.mxu3 %vm1596_vm4, %v1138_v58 }
 0x122   : > { %v625_v4 = vpop.permute.xlu1 %624 }
 0x125   : > { %1144 = vmatpush.bf16.msk.msra.mxu0 %vm1596_vm4, %v1143_v59  ;;  %1216 = vmatpush.bf16.msk.msra.mxu3 %vm1596_vm4, %v1143_v59 }
 0x128   : > { %1145 = vmatmul.msk.bf16.vlgmr.msra.gmra.mxu0 %vm549_vm5, %v1204_v60  ;;  %1146 = vmatmul.msk.bf16.vlgmr.msra.gmra.mxu3 %vm549_vm5, %v1205_v61  ;;  %v620_v5 = vpop.permute.xlu0 %619 }
 0x12a   : > { %v610_v12 = vpop.permute.xlu1 %609 }
 0x130   : > { %v587_v16 = vpop.permute.xlu0 %586 }
 0x1a5   : > { %v565_v6 = vpop.f32.mrf.mxu0 }
 0x1a6   : > { %v566_v7 = vadd.f32 %v565_v6, %v522_v1 }
 0x1a8   : > { %v599_v9 = vmul.f32 %v582_v8, %v566_v7 }
 0x1aa   : > { %v627_v14 = vadd.f32 %v610_v12, %v599_v9 }
 0x1ab   : > { %v570_v10 = vpop.f32.mrf.mxu3 }
 0x1ac   : > { %v571_v11 = vadd.f32 %v570_v10, %v532_v63  ;;  %v631_v22 = vmax.f32 %v627_v14, 0.0 }
 0x1ad   : > { %v567_v13 = vpop.f32.mrf.mxu0 }
 0x1ae   : > { %v568_v15 = vadd.f32 %v567_v13, %v527_v3  ;;  %v601_v19 = vmul.f32 %v592_v0, %v571_v11  ;;  %v1617_v30 = vadd.f32 %v631_v22, %v1538_v26  ;;  %v1206_v3 = vld [vmem:[%s1798_s3 + $0x10] sm:$0xff] }
 0x1b0   : > { %v600_v20 = vmul.f32 %v587_v16, %v568_v15  ;;  %v629_v27 = vadd.f32 %v620_v5, %v601_v19 }
 0x1b2   : > { %v628_v23 = vadd.f32 %v615_v21, %v600_v20  ;;  %v633_v33 = vmax.f32 %v629_v27, 0.0 }
 0x1b3   : > { %v572_v24 = vpop.f32.mrf.mxu3 }
 0x1b4   : > { %v632_v28 = vmax.f32 %v628_v23, 0.0  ;;  %v573_v29 = vadd.f32 %v572_v24, %v537_v62  ;;  %v1626_v37 = vadd.f32 %v633_v33, %v1528_v17  ;;  %v1154_v17 = vld [vmem:[%s1799_s4 + $0x38] sm:$0xff] }
 0x1b6   : > { %v1620_v31 = vadd.f32 %v632_v28, %v1536_v25  ;;  %v602_v32 = vmul.f32 %v597_v2, %v573_v29  ;;  %v1153_v25 = vld [vmem:[%s1799_s4 + $0x30] sm:$0xff] }
 0x1b8   : > { %v630_v34 = vadd.f32 %v625_v4, %v602_v32  ;;  %v1292_v35 = vpack.i.bf16 %v1620_v31, %v1617_v30  ;;  %v677_v62 = vpack.c.bf16 %v1620_v31, %v1617_v30  ;;  %v1207_v4 = vld [vmem:[%s1798_s3 + $0x18] sm:$0xff] }
 0x1ba   : > { %v634_v36 = vmax.f32 %v630_v34, 0.0  ;;  %1293 = vrot.lane.b32.xlu1 %v1292_v35, %s1380_s27 }
 0x1bc   : > { %v1629_v38 = vadd.f32 %v634_v36, %v1530_v18  ;;  %v1184_v18 = vld [vmem:[%s1800_s5 + $0x38] sm:$0xff] }
 0x1be   : > { %v1297_v26 = vpack.i.bf16 %v1629_v38, %v1626_v37  ;;  %v678_v58 = vpack.c.bf16 %v1629_v38, %v1626_v37 }
 0x1c0   : > { %1298 = vrot.lane.b32.xlu2 %v1297_v26, %s1379_s23  ;;  %1288 = vrot.lane.b32.xlu0 %v1297_v26, %s1380_s27 }
 0x1c2   : > { %703 = vperm.xlu1 %1265, %v1153_v25  }
 0x1c8   : > { %708 = vperm.xlu2 %1266, %v1154_v17   ;;  %1303 = vrot.lane.b32.xlu0 %v1292_v35, %s1379_s23  ;;  %s400_s23 = sand.u32 1, %s1368_s22  }
 0x1c9   : > { %s1120_s29 = sshll.u32 %s400_s23, 5  ;;  %s1042_s27 = scalar_lea.sflag [#allocation3], %s400_s23 }
 0x1ca   : > { %768 = vperm.xlu1 %1265, %v1184_v18  }
 0x1d0   : > { %693 = vperm.xlu2 %1266, %v1151_v39   ;;  %763 = vperm.xlu0 %1264, %v1183_v40  }
 0x1d2   : > { %792 = vperm.xlu1 %1265, %v1187_v41  }
 0x1d8   : > { %797 = vperm.xlu2 %1266, %v1188_v42   ;;  %698 = vperm.xlu0 %1264, %v1152_v44  }
 0x1da   : > { %758 = vperm.xlu1 %1265, %v1182_v45   ;;  %v872_v45 = vld [vmem:[%s1803_s8] sm:$0xff] }
 0x1e0   : > { %782 = vperm.xlu2 %1266, %v1185_v46   ;;  %753 = vperm.xlu0 %1264, %v1181_v47   ;;  %v874_v46 = vld [vmem:[%s1803_s8 + $0x10] sm:$0xff]  ;;  %v981_v47 = vld [vmem:[%s1804_s9] sm:$0xff] }
 0x1e8   : > { %787 = vperm.xlu0 %1264, %v1186_v48   ;;  %v983_v48 = vld [vmem:[%s1804_s9 + $0x10] sm:$0xff] }
 0x21a   : > { %v1299_v59 = vpop.permute.xlu2 %1298 }
 0x21b   : > { %v1301_v60 = vunpack.i.h.bf16 %v1299_v59  ;;  %v1300_v61 = vunpack.i.l.bf16 %v1299_v59 }
 0x21d   : > { %v1172_v0 = vpack.c.bf16 %v1301_v60, %v1300_v61 }
 0x222   : > { %v709_v5 = vpop.permute.xlu2 %708 }
 0x22a   : > { %v694_v8 = vpop.permute.xlu2 %693 }
 0x22c   : > { %v1294_v49 = vpop.permute.xlu1 %1293 }
 0x22d   : > { %v1296_v53 = vunpack.i.h.bf16 %v1294_v49  ;;  %v1295_v54 = vunpack.i.l.bf16 %v1294_v49  ;;  %v982_v49 = vld [vmem:[%s1804_s9 + $0x8] sm:$0xff] }
 0x22f   : > { %v1167_v57 = vpack.c.bf16 %v1296_v53, %v1295_v54  ;;  %v1011_v53 = vld [vmem:[%s1805_s10 + $0x10] sm:$0xff]  ;;  %v1012_v54 = vld [vmem:[%s1805_s10 + $0x18] sm:$0xff] }
 0x232   : > { %v1289_v50 = vpop.permute.xlu0 %1288  ;;  %v798_v11 = vpop.permute.xlu2 %797 }
 0x233   : > { %v1291_v51 = vunpack.i.h.bf16 %v1289_v50  ;;  %v1290_v52 = vunpack.i.l.bf16 %v1289_v50  ;;  %v984_v50 = vld [vmem:[%s1804_s9 + $0x18] sm:$0xff] }
 0x234   : > { %v704_v6 = vpop.permute.xlu1 %703 }
 0x235   : > { %v1164_v56 = vpack.c.bf16 %v1291_v51, %v1290_v52  ;;  %v1010_v51 = vld [vmem:[%s1805_s10 + $0x8] sm:$0xff]  ;;  %v1009_v52 = vld [vmem:[%s1805_s10] sm:$0xff] }
 0x237   : > { %1165 = vmatpush.bf16.msk.msra.mxu1 %vm1580_vm1, %v1164_v56 }
 0x23a   : > { %v1304_v63 = vpop.permute.xlu0 %1303  ;;  %v783_v16 = vpop.permute.xlu2 %782 }
 0x23b   : > { %1168 = vmatpush.bf16.msk.msra.mxu1 %vm1580_vm1, %v1167_v57  ;;  %v1306_v1 = vunpack.i.h.bf16 %v1304_v63  ;;  %v1305_v2 = vunpack.i.l.bf16 %v1304_v63  ;;  %v1308_v57 = vld [vmem:[%s1806_s11 + $0x2] ss:$0 sm:$0xff] }
 0x23c   : > { %v769_v9 = vpop.permute.xlu1 %768 }
 0x23d   : > { %v1177_v43 = vpack.c.bf16 %v1306_v1, %v1305_v2 }
 0x23f   : > { %731 = vmatpush.bf16.msra.mxu1 %v678_v58 }
 0x242   : > { %v764_v7 = vpop.permute.xlu0 %763 }
 0x243   : > { %732 = vmatpush.bf16.msra.mxu1 %v677_v62 }
 0x244   : > { %v793_v12 = vpop.permute.xlu1 %792 }
 0x247   : > { %1173 = vmatpush.bf16.msk.msra.mxu1 %vm1596_vm4, %v1172_v0 }
 0x24a   : > { %v699_v10 = vpop.permute.xlu0 %698 }
 0x24b   : > { %1178 = vmatpush.bf16.msk.msra.mxu1 %vm1596_vm4, %v1177_v43 }
 0x24c   : > { %v759_v24 = vpop.permute.xlu1 %758 }
 0x24e   : > { %1179 = vmatmul.msk.bf16.vlgmr.msra.gmra.mxu1 %vm549_vm5, %v1206_v3 }
 0x252   : > { %v754_v55 = vpop.permute.xlu0 %753 }
 0x25a   : > { %v788_v28 = vpop.permute.xlu0 %787 }
 0x25e   : > { %1180 = vmatmul.msk.bf16.gmra.mxu1 %vm549_vm5, %v1207_v4 }
 0x2cb   : > { %v736_v13 = vpop.f32.mrf.mxu1 }
 0x2cc   : > { %v737_v14 = vadd.f32 %v736_v13, %v694_v8 }
 0x2ce   : > { %v771_v15 = vmul.f32 %v754_v55, %v737_v14 }
 0x2d0   : > { %v800_v19 = vadd.f32 %v783_v16, %v771_v15 }
 0x2d2   : > { %v804_v20 = vmax.f32 %v800_v19, 0.0 }
 0x2d3   : > { %v738_v21 = vpop.f32.mrf.mxu1 }
 0x2d4   : > { %v739_v22 = vadd.f32 %v738_v21, %v699_v10  ;;  %v1693_v23 = vadd.f32 %v804_v20, %v1617_v30 }
 0x2d6   : > { %v772_v27 = vmul.f32 %v759_v24, %v739_v22  ;;  %839 = vrot.lane.b32.xlu0 %v1693_v23, %s1381_s15  ;;  %v1208_v22 = vld [vmem:[%s1802_s7] sm:$0xff]  ;;  %v1209_v24 = vld [vmem:[%s1802_s7 + $0x8] sm:$0xff] }
 0x2d8   : > { %v801_v29 = vadd.f32 %v788_v28, %v772_v27  ;;  %v1383_v28 = vmov 32.0  }
 0x2d9   : > { %1310 = vrcp.f32 %v1383_v28 }
 0x2da   : > { %v805_v32 = vmax.f32 %v801_v29, 0.0 }
 0x2db   : > { %v741_v33 = vpop.f32.mrf.mxu1 }
 0x2dc   : > { %v742_v34 = vadd.f32 %v741_v33, %v704_v6  ;;  %v1697_v35 = vadd.f32 %v805_v32, %v1620_v31 }
 0x2de   : > { %v773_v36 = vmul.f32 %v764_v7, %v742_v34  ;;  %v864_v26 = vpack.c.bf16 %v1697_v35, %v1693_v23 }
 0x2df   : > { %v1311_v34 = vpop.eup %1310 }
 0x2e0   : > { %v802_v25 = vadd.f32 %v793_v12, %v773_v36  ;;  %vm945_vm8 = vweird.f32 %v1311_v34 }
 0x2e2   : > { %v806_v30 = vmax.f32 %v802_v25, 0.0 }
 0x2e3   : > { %v743_v17 = vpop.f32.mrf.mxu1 }
 0x2e4   : > { %v744_v18 = vadd.f32 %v743_v17, %v709_v5  ;;  %v810_v39 = vadd.f32 %v806_v30, %v1626_v37  ;;  %v873_v37 = vld [vmem:[%s1803_s8 + $0x8] sm:$0xff]  ;;  %v941_v30 = vmul.f32 32.0, %v1311_v34 }
 0x2e6   : > { %v774_v40 = vmul.f32 %v769_v9, %v744_v18  ;;  %843 = vrot.lane.b32.xlu1 %v810_v39, %s1381_s15  ;;  %v1309_v9 = vld [vmem:[%s1806_s11] ss:$0 sm:$0xff] }
 0x2e8   : > { %v803_v41 = vadd.f32 %v798_v11, %v774_v40 }
 0x2ea   : > { %v807_v42 = vmax.f32 %v803_v41, 0.0 }
 0x2ec   : > { %v811_v44 = vadd.f32 %v807_v42, %v1629_v38  ;;  %v875_v38 = vld [vmem:[%s1803_s8 + $0x18] sm:$0xff]  ;;  %v942_v42 = vsub.f32 1.0, %v941_v30 }
 0x2ee   : > { %845 = vrot.lane.b32.xlu2 %v811_v44, %s1381_s15  ;;  %841 = vrot.lane.b32.xlu1 %v1697_v35, %s1381_s15  ;;  %v865_v31 = vpack.c.bf16 %v811_v44, %v810_v39  ;;  %s1210_s15 = sshll.u32 %s1472_s25, 5 }
 0x2ef   : > { %822 = vrot.lane.b32.xlu0 %v811_v44, %s1382_s16  ;;  %s1053_s19 = scalar_lea.hbm %s1807_s12, %s1210_s15  ;;  %s1334_s15 = scalar_lea.hbm %s1807_s12, 64 }
 0x2f0   : > { %s1056_s25 = sshll.u32 %s1053_s19, 4  ;;  %s1057_s25 = int_to_ptr.hbm [resolvable:$true] %s1056_s25 }
 0x2f1   : > { %s1328_s26 = sshra.s32 %s1057_s25, 4  ;;  %s1329_s26 = int_to_ptr.hbm [resolvable:$true] %s1328_s26 }
 0x2f2   : > { %s1330_s28 = scalar_lea.hbm %s1329_s26, 32  ;;  %p1335_p0 = scmp.lt.s32.totalorder %s1329_s26, %s1807_s12 }
 0x2f3   : > { %p1331_p11 = scmp.ne.s32.totalorder %s1329_s26, %s1330_s28  ;;  %p1336_p1 = scmp.lt.s32.totalorder %s1334_s15, %s1330_s28 }
 0x2f5   : > { %p1332_p12 = pnand %p1331_p11, %p1489_p5  ;;  %p1337_p2 = por %p1336_p1, %p1335_p0 }
 0x2f6   : > { %820 = vrot.lane.b32.xlu2 %v810_v39, %s1382_s16  ;;  %816 = vrot.lane.b32.xlu1 %v1693_v23, %s1382_s16 }
 0x2f7   : > { %878 = vperm.xlu0 %1264, %v872_v45   ;;  %v943_v45 = vmul.f32 %v1311_v34, %v942_v42  ;;  %p1333_p13 = pneg %p1332_p12 }
 0x2f9   : > { %p1338_p3 = pnand %p1337_p2, %p1333_p13 }
 0x2fe   : > { %818 = vrot.lane.b32.xlu2 %v1697_v35, %s1382_s16  ;;  %883 = vperm.xlu1 %1265, %v873_v37   ;;  %s402_s16 = scalar_lea.vmem [#allocation2], %s1120_s29 }
 0x2ff   : > { %893 = vperm.xlu0 %1264, %v875_v38   ;;  %s1054_s20 = sshll.u32 %s402_s16, 4  ;;  %s1055_s20 = int_to_ptr.vmem [resolvable:$true] %s1054_s20 }
 0x306   : > { %888 = vperm.xlu2 %1266, %v874_v46   ;;  %987 = vperm.xlu1 %1265, %v981_v47   ;;  %v944_v46 = vadd.f32 %v1311_v34, %v943_v45 }
 0x307   : > { %997 = vperm.xlu0 %1264, %v983_v48  }
 0x30e   : > { %992 = vperm.xlu2 %1266, %v982_v49   ;;  %1002 = vperm.xlu1 %1265, %v984_v50   ;;  %v946_v49 = vsel %vm945_vm8, %v1311_v34, %v944_v46 }
 0x30f   : > { %1020 = vperm.xlu0 %1264, %v1010_v51  }
 0x316   : > { %1015 = vperm.xlu2 %1266, %v1009_v52   ;;  %1025 = vperm.xlu1 %1265, %v1011_v53  }
 0x31e   : > { %1030 = vperm.xlu2 %1266, %v1012_v54  }
 0x348   : > { %v846_v56 = vpop.permute.xlu2 %845  ;;  %v840_v63 = vpop.permute.xlu0 %839 }
 0x349   : > { %v855_v58 = vsel %vm851_vm6, %v846_v56, 0.0  ;;  %v852_v1 = vsel %vm851_vm6, %v840_v63, 0.0 }
 0x34a   : > { %v861_v61 = vmul.f32 %v1308_v57, %v855_v58  ;;  %v858_v3 = vmul.f32 %v1308_v57, %v852_v1 }
 0x350   : > { %v821_v4 = vpop.permute.xlu2 %820 }
 0x351   : > { %v831_v11 = vsel %vm828_vm7, 0.0, %v821_v4 }
 0x352   : > { %v837_v55 = vmul.f32 %v1309_v9, %v831_v11 }
 0x358   : > { %v844_v59 = vpop.permute.xlu1 %843  ;;  %v819_v12 = vpop.permute.xlu2 %818 }
 0x359   : > { %v854_v60 = vsel %vm851_vm6, %v844_v59, 0.0  ;;  %v830_v15 = vsel %vm828_vm7, 0.0, %v819_v12 }
 0x35a   : > { %v860_v62 = vmul.f32 %v1308_v57, %v854_v60  ;;  %v836_v20 = vmul.f32 %v1309_v9, %v830_v15 }
 0x35c   : > { %v867_v0 = vpack.c.bf16 %v861_v61, %v860_v62 }
 0x35e   : > { %914 = vmatpush.bf16.msra.mxu2 %v867_v0 }
 0x360   : > { %v842_v2 = vpop.permute.xlu1 %841  ;;  %v889_v36 = vpop.permute.xlu2 %888 }
 0x361   : > { %v853_v43 = vsel %vm851_vm6, %v842_v2, 0.0  ;;  %v823_v7 = vpop.permute.xlu0 %822 }
 0x362   : > { %v859_v5 = vmul.f32 %v1308_v57, %v853_v43  ;;  %v832_v8 = vsel %vm828_vm7, 0.0, %v823_v7 }
 0x363   : > { %v838_v13 = vmul.f32 %v1309_v9, %v832_v8 }
 0x364   : > { %v866_v6 = vpack.c.bf16 %v859_v5, %v858_v3 }
 0x365   : > { %v863_v19 = vpack.c.bf16 %v838_v13, %v837_v55 }
 0x366   : > { %915 = vmatpush.bf16.msra.mxu2 %v866_v6 }
 0x368   : > { %v817_v10 = vpop.permute.xlu1 %816  ;;  %v993_v8 = vpop.permute.xlu2 %992 }
 0x369   : > { %v829_v14 = vsel %vm828_vm7, 0.0, %v817_v10  ;;  %v879_v29 = vpop.permute.xlu0 %878 }
 0x36a   : > { %916 = vmatpush.bf16.msra.mxu2 %v865_v31  ;;  %v835_v16 = vmul.f32 %v1309_v9, %v829_v14 }
 0x36c   : > { %v862_v21 = vpack.c.bf16 %v836_v20, %v835_v16 }
 0x36e   : > { %917 = vmatpush.bf16.msra.mxu2 %v864_v26 }
 0x370   : > { %v884_v33 = vpop.permute.xlu1 %883  ;;  %v1016_v55 = vpop.permute.xlu2 %1015 }
 0x371   : > { %v894_v18 = vpop.permute.xlu0 %893 }
 0x372   : > { %918 = vmatpush.bf16.msra.mxu2 %v863_v19 }
 0x376   : > { %919 = vmatpush.bf16.msra.mxu2 %v862_v21 }
 0x378   : > { %v988_v7 = vpop.permute.xlu1 %987  ;;  %v1031_v34 = vpop.permute.xlu2 %1030 }
 0x379   : > { %1197 = vmatmul.msk.bf16.vlgmr.msra.gmra.mxu2 %vm549_vm5, %v1208_v22  ;;  %v998_v12 = vpop.permute.xlu0 %997 }
 0x380   : > { %v1003_v13 = vpop.permute.xlu1 %1002 }
 0x389   : > { %1198 = vmatmul.msk.bf16.gmra.mxu2 %vm549_vm5, %v1209_v24 }
 0x3fc   : > { %v921_v23 = vpop.f32.mrf.mxu2 }
 0x3fd   : > { %v922_v26 = vadd.f32 %v921_v23, %v879_v29 }
 0x404   : > { %v923_v27 = vpop.f32.mrf.mxu2 }
 0x405   : > { %v924_v35 = vadd.f32 %v923_v27, %v884_v33  ;;  %v1026_v33 = vpop.permute.xlu1 %1025 }
 0x407   : > { %v931_v17 = vadd.f32 %v924_v35, %v922_v26 }
 0x40c   : > { %v926_v32 = vpop.f32.mrf.mxu2 }
 0x40d   : > { %v927_v25 = vadd.f32 %v926_v32, %v889_v36  ;;  %v1021_v32 = vpop.permute.xlu0 %1020 }
 0x40f   : > { %v932_v40 = vadd.f32 %v931_v17, %v927_v25 }
 0x414   : > { %v928_v39 = vpop.f32.mrf.mxu2 }
 0x415   : > { %v929_v41 = vadd.f32 %v928_v39, %v894_v18 }
 0x417   : > { %v933_v44 = vadd.f32 %v932_v40, %v929_v41 }
 0x419   : > { %v934_v31 = vrot.slane %v933_v44, 4 }
 0x41b   : > { %v935_v37 = vadd.f32 %v934_v31, %v933_v44 }
 0x41d   : > { %v936_v38 = vrot.slane %v935_v37, 2 }
 0x41f   : > { %v937_v47 = vadd.f32 %v936_v38, %v935_v37 }
 0x421   : > { %v938_v48 = vrot.slane %v937_v47, 1 }
 0x423   : > { %v939_v50 = vadd.f32 %v938_v48, %v937_v47 }
 0x425   : > { %v947_v51 = vmul.f32 %v946_v49, %v939_v50 }
 0x427   : > { %v948_v52 = vsub.f32 %v922_v26, %v947_v51  ;;  %v949_v53 = vsub.f32 %v924_v35, %v947_v51  ;;  %v950_v54 = vsub.f32 %v927_v25, %v947_v51  ;;  %v951_v56 = vsub.f32 %v929_v41, %v947_v51 }
 0x429   : > { %v952_v57 = vmul.f32 %v948_v52, %v948_v52  ;;  %v953_v58 = vmul.f32 %v949_v53, %v949_v53  ;;  %v954_v59 = vmul.f32 %v950_v54, %v950_v54  ;;  %v955_v61 = vmul.f32 %v951_v56, %v951_v56 }
 0x42b   : > { %v956_v60 = vadd.f32 %v953_v58, %v952_v57 }
 0x42d   : > { %v957_v62 = vadd.f32 %v956_v60, %v954_v59 }
 0x42f   : > { %v958_v63 = vadd.f32 %v957_v62, %v955_v61 }
 0x431   : > { %v959_v0 = vrot.slane %v958_v63, 4 }
 0x433   : > { %v960_v1 = vadd.f32 %v959_v0, %v958_v63 }
 0x435   : > { %v961_v2 = vrot.slane %v960_v1, 2 }
 0x437   : > { %v962_v43 = vadd.f32 %v961_v2, %v960_v1 }
 0x439   : > { %v963_v3 = vrot.slane %v962_v43, 1 }
 0x43b   : > { %v964_v4 = vadd.f32 %v963_v3, %v962_v43 }
 0x43d   : > { %v965_v5 = vmul.f32 %v964_v4, %v946_v49 }
 0x43f   : > { %v966_v6 = vadd.f32 1e-05, %v965_v5 }
 0x441   : > { %1312 = vrsqrt.f32 %v966_v6  ;;  %vm973_vm10 = vweird.f32 %v966_v6 }
 0x447   : > { %v1313_v9 = vpop.eup %1312 }
 0x448   : > { %v968_v10 = vmul.f32 %v1313_v9, %v966_v6  ;;  %vm974_vm9 = vweird.f32 %v1313_v9 }
 0x449   : > { %vm975_vm11 = vmor %vm973_vm10, %vm974_vm9 }
 0x44a   : > { %v969_v11 = vmul.f32 %v1313_v9, %v968_v10 }
 0x44c   : > { %v970_v14 = vmul.f32 0.5, %v969_v11 }
 0x44e   : > { %v971_v15 = vsub.f32 1.5, %v970_v14 }
 0x450   : > { %v972_v16 = vmul.f32 %v1313_v9, %v971_v15 }
 0x452   : > { %v976_v19 = vsel %vm975_vm11, %v1313_v9, %v972_v16 }
 0x453   : > { %v977_v20 = vmul.f32 %v976_v19, %v948_v52  ;;  %v978_v21 = vmul.f32 %v976_v19, %v949_v53  ;;  %v979_v22 = vmul.f32 %v976_v19, %v950_v54  ;;  %v980_v24 = vmul.f32 %v976_v19, %v951_v56 }
 0x455   : > { %v1005_v23 = vmul.f32 %v988_v7, %v977_v20  ;;  %v1006_v27 = vmul.f32 %v993_v8, %v978_v21  ;;  %v1007_v28 = vmul.f32 %v998_v12, %v979_v22  ;;  %v1008_v29 = vmul.f32 %v1003_v13, %v980_v24 }
 0x457   : > { %v1033_v35 = vadd.f32 %v1016_v55, %v1005_v23  ;;  %v1034_v36 = vadd.f32 %v1021_v32, %v1006_v27  ;;  %v1035_v26 = vadd.f32 %v1026_v33, %v1007_v28  ;;  %v1036_v25 = vadd.f32 %v1031_v34, %v1008_v29 }
 0x459   : > { %1037 = vst [vmem:[%s402_s16] sm:$0xff] %v1033_v35 }
 0x45a   : > { %1038 = vst [vmem:[%s402_s16 + $0x8] sm:$0xff] %v1034_v36 }
 0x45b   : > { %1039 = vst [vmem:[%s402_s16 + $0x10] sm:$0xff] %v1035_v26 }
 0x45c   : > { %1040 = vst [vmem:[%s402_s16 + $0x18] sm:$0xff] %v1036_v25 }
 0x45d   : > { %1341 = shalt.err (!%p1338_p3)
}
 0x45e   : > { %s1384_s23 = smov 128   ;;  %s1385_s19 = smov 8  }
 0x45f   : > { %1217 = dma.vmem_to_hbm [thread:$0]  (%p1489_p5), %s1055_s20, 512, %s1057_s25, %s1042_s27, %s1384_s23, %s1384_s23, %s1385_s19  }
 0x460 PF: > { %p1223_p4 = scmp.ge.s32.totalorder %s1376_s24, 2  ;;  %s1071_s16 = sand.u32 1, %s1364_s21  }
 0x461   : > { %s1072_s30 = scalar_lea.sflag [#allocation3], %s1071_s16 }
 0x462   : > { %p1220_p7 = pnand %p1223_p4, %p1493_p6 }
 0x464   : > { %p1221_p8 = pneg %p1220_p7 }
 0x466   : > { %1359 = dma.done.wait (%p1221_p8), %s1072_s30, 512  }
 0x467   : > { %1361 = vsyncadd (%p1221_p8), %s1072_s30, 4294966784  ;;  %s1820_s24 = sld [smem:[#allocation6_spill]]  ;;  %s1823_s21 = smov %s1368_s22 }
 0x468   : > { %s1821_s26 = sld [smem:[#allocation5_spill]] }
 0x469   : > { %s1822_s23 = sld [smem:[#allocation7_spill]] }
 0x46d   : > { %p22_p9 = scmp.ge.s32.totalorder %s1820_s24, 4  }
 0x46e   : > { %s1824_s22 = smov %s1821_s26 }
 0x46f   :  { %24 = sbr.rel (!%p22_p9) target bundleno = 3 (0x3), region = 107 }
 0x474   :  { %1078 = vsyncpa [#allocation3], 1 }
 0x475   :  { %1080 = vsyncpa [#allocation3 + $0x1], 1 }

</bundles_post_ra>
